<compile_context>
chip_gen: v6e
topology: v6e:2x2x1
jax: 0.10.0
libtpu: 0.0.40
codegen_flags: <defaults>
</compile_context>

<pallas_src>
import functools

import jax
import jax.numpy as jnp
from jax.experimental import pallas as pl
from jax.experimental.pallas import tpu as pltpu


def _round_up(x, m):
    return ((x + m - 1) // m) * m


# --------------------------------------------------------------------------
# Kernels
# --------------------------------------------------------------------------
def _head(x, w_ref, b1_ref, w2_ref, b2_ref):
    """Fused head: (BB, K) activations -> (BB,) logits.

    K is S*V (flattened one-hot path; W is the S-tiled fused weight) or V
    (index/count path; W is the fused weight).  The final Hp->1 projection
    is a VPU multiply + lane reduction (no N=1 MXU matmul).
    """
    h = jnp.dot(x, w_ref[...], preferred_element_type=jnp.float32)   # (BB,Hp)
    h = jnp.maximum(h + b1_ref[...], 0.0)                            # ReLU
    return jnp.sum(h * w2_ref[...], axis=-1) + b2_ref[0]             # (BB,)


def _onehot_dga_kernel(x_ref, w_ref, b1_ref, w2_ref, b2_ref, out_ref):
    """3-D path, flattened: x_ref (BB, S*V) bf16 relaxed one-hot rows.

    No in-kernel pooling: the sequence reduction is folded into the matmul
    against the S-tiled fused weight, so this is one DMA + one MXU matmul.
    """
    x = x_ref[...].astype(jnp.float32)                          # exact for 0/1
    logit = _head(x, w_ref, b1_ref, w2_ref, b2_ref)             # (BB,)
    out_ref[...] = logit.reshape(1, -1).astype(out_ref.dtype)   # lane-dense


def _index_dga_kernel(idx_ref, w_ref, b1_ref, w2_ref, b2_ref, out_ref):
    """2-D path: idx_ref (BB, S) int32 character ids (no HBM one-hot)."""
    idx = idx_ref[...]                                          # (BB, S) int32
    bb, seq = idx.shape
    vocab = w_ref.shape[0]
    v_iota = jax.lax.broadcasted_iota(jnp.int32, (bb, vocab), 1)
    counts = jnp.zeros((bb, vocab), jnp.int32)      # int32 accumulate (VPU)
    for s in range(seq):                            # S small & static: unroll
        counts = counts + (idx[:, s:s + 1] == v_iota).astype(jnp.int32)
    x_sum = counts.astype(jnp.float32)              # single convert, then MXU
    logit = _head(x_sum, w_ref, b1_ref, w2_ref, b2_ref)         # (BB,)
    out_ref[...] = logit.reshape(1, -1).astype(out_ref.dtype)   # lane-dense


# --------------------------------------------------------------------------
# pallas_call runners
# --------------------------------------------------------------------------
@functools.partial(jax.jit, static_argnames=("batch_block", "vmem_limit"))
def _run_onehot(x_flat, w_exp, b1, w2r, b2, *, batch_block, vmem_limit):
    B, K = x_flat.shape
    Hp = w_exp.shape[1]
    grid_b = pl.cdiv(B, batch_block)
    b_pad = grid_b * batch_block
    if b_pad != B:                       # pad ragged batch with zero rows
        x_flat = jnp.pad(x_flat, ((0, b_pad - B), (0, 0)))
    out = pl.pallas_call(
        _onehot_dga_kernel,
        out_shape=jax.ShapeDtypeStruct((1, b_pad), jnp.float32),
        grid_spec=pltpu.PrefetchScalarGridSpec(
            num_scalar_prefetch=0,
            grid=(grid_b,),
            in_specs=[
                pl.BlockSpec((batch_block, K), lambda i: (i, 0)),   # x (bf16)
                pl.BlockSpec((K, Hp), lambda i: (0, 0)),   # W_exp (resident)
                pl.BlockSpec((1, Hp), lambda i: (0, 0)),   # b1
                pl.BlockSpec((1, Hp), lambda i: (0, 0)),   # w2 row
                pl.BlockSpec(memory_space=pltpu.MemorySpace.SMEM),  # b2 scalar
            ],
            out_specs=pl.BlockSpec((1, batch_block), lambda i: (0, i)),
        ),
        compiler_params=pltpu.CompilerParams(
            dimension_semantics=("parallel",),
            vmem_limit_bytes=vmem_limit),
    )(x_flat, w_exp, b1, w2r, b2)
    return out[0, :B].reshape(B, 1)


@functools.partial(jax.jit, static_argnames=("batch_block", "vmem_limit"))
def _run_index(idx, w, b1, w2r, b2, *, batch_block, vmem_limit):
    B, S = idx.shape
    V, Hp = w.shape
    grid_b = pl.cdiv(B, batch_block)
    b_pad = grid_b * batch_block
    if b_pad != B:                       # id 0 is a valid pad value
        idx = jnp.pad(idx, ((0, b_pad - B), (0, 0)))
    out = pl.pallas_call(
        _index_dga_kernel,
        out_shape=jax.ShapeDtypeStruct((1, b_pad), jnp.float32),
        grid_spec=pltpu.PrefetchScalarGridSpec(
            num_scalar_prefetch=0,
            grid=(grid_b,),
            in_specs=[
                pl.BlockSpec((batch_block, S), lambda i: (i, 0)),   # ids
                pl.BlockSpec((V, Hp), lambda i: (0, 0)),   # fused W (resident)
                pl.BlockSpec((1, Hp), lambda i: (0, 0)),   # b1
                pl.BlockSpec((1, Hp), lambda i: (0, 0)),   # w2 row
                pl.BlockSpec(memory_space=pltpu.MemorySpace.SMEM),  # b2 scalar
            ],
            out_specs=pl.BlockSpec((1, batch_block), lambda i: (0, i)),
        ),
        compiler_params=pltpu.CompilerParams(
            dimension_semantics=("parallel",),
            vmem_limit_bytes=vmem_limit),
    )(idx, w, b1, w2r, b2)
    return out[0, :B].reshape(B, 1)


# --------------------------------------------------------------------------
# Wrapper
# --------------------------------------------------------------------------
class OneHotModelInputWrapper:
    """JAX/Pallas port of the PyTorch OneHotModelInputWrapper."""

    _MAX_TILE_ONEHOT = 2048            # batch rows per grid step, 3-D path
    _MAX_TILE_INDEX = 8192             # batch rows per grid step, index path

    def __init__(self, emb_w, w1, b1, w2, b2):
        V, E = emb_w.shape
        H = w1.shape[1]
        Hp = _round_up(max(H, 128), 128)            # lane-pad hidden dim
        self.vocab = V
        self.hidden_p = Hp
        self.emb_w = jnp.asarray(emb_w, jnp.float32)            # (V, E)
        self._w1p = jnp.pad(jnp.asarray(w1, jnp.float32),
                            ((0, 0), (0, Hp - H)))               # (E, Hp)
        self._b1p = jnp.pad(jnp.asarray(b1, jnp.float32).reshape(1, H),
                            ((0, 0), (0, Hp - H)))               # (1, Hp)
        self._w2p = jnp.pad(jnp.asarray(w2, jnp.float32).reshape(1, H),
                            ((0, 0), (0, Hp - H)))               # (1, Hp)
        self._b2 = jnp.asarray(b2, jnp.float32).reshape(1)       # (1,) SMEM
        self._fused_w = {}             # seq_len -> (W_fused (V,Hp), W_exp)
        # VMEM budget: <=75% of physical (~48 MiB on v7x's 64 MiB,
        # ~96 MiB on v5e/v6e's 128 MiB), also used as vmem_limit_bytes.
        try:
            vmem_cap = int(pltpu.get_tpu_info().vmem_capacity_bytes)
        except Exception:
            vmem_cap = 64 * 1024 * 1024
        self._vmem_budget = min((vmem_cap * 3) // 4, 96 * 1024 * 1024)

    # -- weights ----------------------------------------------------------
    def _fused(self, seq_len):
        """embedding matmul + Dense1 + mean-pool 1/S fused offline, cached."""
        cached = self._fused_w.get(seq_len)
        if cached is None:
            w_fused = jnp.dot(self.emb_w, self._w1p) / float(seq_len)  # (V,Hp)
            w_exp = jnp.tile(w_fused, (seq_len, 1))                    # (SV,Hp)
            cached = (w_fused, w_exp)
            self._fused_w[seq_len] = cached
        return cached

    # -- tiling -----------------------------------------------------------
    def _pick_tile(self, B, per_row_stream, per_row_temp, resident, max_tile):
        """Largest 128-multiple batch tile whose real (lane-padded,
        double-buffered) VMEM footprint fits the budget; keep >=~4 grid
        steps when the batch allows so the "parallel" axis can shard across
        TensorCores (v7x: 2 TCs, only 64 MiB VMEM)."""
        if B <= 128:
            return B                   # single full-batch block
        avail = self._vmem_budget - 2 * resident
        denom = 2 * per_row_stream + per_row_temp + 8   # +8: 2x f32 out lanes
        bb = max(128, (max(avail, 0) // max(denom, 1)) // 128 * 128)
        bb = min(bb, max_tile)
        if B >= 256:
            bb = min(bb, max(128, _round_up(pl.cdiv(B, 4), 128)))
        return min(bb, _round_up(B, 128))

    # -- forward ----------------------------------------------------------
    def __call__(self, input_domains):
        """Forward pass.

        * 3-D (B, S, V) relaxed one-hot vectors: torch.matmul(x, emb.W)->net.
          Flattened to (B, S*V) bf16 (exact for true one-hots; rounds relaxed
          inputs) and matmul'd against the S-tiled fused f32 weight.
        * 2-D (B, S) integer ids: embedding lookup -> net, without ever
          building a (B, S, V) one-hot in HBM.
        NOTE: if you hold exact one-hots, pass the integer ids instead (2-D
        path) -- it moves V-times fewer HBM bytes per token.
        """
        Hp = self.hidden_p
        if input_domains.ndim == 3:
            B, S, V = input_domains.shape
            assert V == self.vocab
            _, w_exp = self._fused(S)
            K = S * V
            x_flat = jnp.asarray(input_domains).reshape(B, K).astype(
                jnp.bfloat16)
            k_pad = _round_up(K, 128)                       # lane padding
            per_row_stream = k_pad * 2                      # bf16 x block row
            per_row_temp = k_pad * 4 + Hp * 4 + 64          # f32 cast + h
            resident = (_round_up(K, 8) * Hp + 16 * Hp) * 4
            bb = self._pick_tile(B, per_row_stream, per_row_temp, resident,
                                 self._MAX_TILE_ONEHOT)
            return _run_onehot(x_flat, w_exp, self._b1p, self._w2p, self._b2,
                               batch_block=bb, vmem_limit=self._vmem_budget)

        B, S = input_domains.shape
        w_fused, _ = self._fused(S)
        idx = jnp.asarray(input_domains, jnp.int32)
        v_pad = _round_up(self.vocab, 128)
        per_row_stream = _round_up(S, 128) * 4              # int32 ids row
        per_row_temp = v_pad * 12 + Hp * 4 + 64             # counts/cast/h
        resident = (_round_up(self.vocab, 8) * Hp + 16 * Hp) * 4
        bb = self._pick_tile(B, per_row_stream, per_row_temp, resident,
                             self._MAX_TILE_INDEX)
        return _run_index(idx, w_fused, self._b1p, self._w2p, self._b2,
                          batch_block=bb, vmem_limit=self._vmem_budget)


# --------------------------------------------------------------------------
# Self-test
# --------------------------------------------------------------------------
if __name__ == "__main__":
    B, S, VOCAB, EMBED, HIDDEN = 2, 8, 40, 32, 64

    key = jax.random.PRNGKey(0)
    k_emb, k_w1, k_b1, k_w2, k_b2, k_idx, k_idx2 = jax.random.split(key, 7)

    emb_w = jax.random.normal(k_emb, (VOCAB, EMBED), jnp.float32) * 0.1
    w1 = jax.random.normal(k_w1, (EMBED, HIDDEN), jnp.float32) * 0.1
    b1 = jax.random.normal(k_b1, (1, HIDDEN), jnp.float32) * 0.1
    w2 = jax.random.normal(k_w2, (HIDDEN, 1), jnp.float32) * 0.1
    b2 = jax.random.normal(k_b2, (1, 1), jnp.float32) * 0.1

    model = OneHotModelInputWrapper(emb_w, w1, b1, w2, b2)

    def reference(x_onehot):
        xe = jnp.einsum("bsv,ve->bse", x_onehot, emb_w)
        pooled = jnp.mean(xe, axis=1)
        h = jnp.maximum(pooled @ w1 + b1, 0.0)
        return h @ w2 + b2

    # --- small-shape check: both wrapper branches (one-hot and index) ---
    idx = jax.random.randint(k_idx, (B, S), 0, VOCAB)
    x_onehot = jax.nn.one_hot(idx, VOCAB, dtype=jnp.float32)
    out_3d = jax.block_until_ready(model(x_onehot))   # relaxed one-hot path
    out_2d = jax.block_until_ready(model(idx))        # index path
    ref = reference(x_onehot)
    assert out_3d.shape == (B, 1) and out_2d.shape == (B, 1)
    assert jnp.allclose(out_3d, ref, atol=1e-4)
    assert jnp.allclose(out_2d, ref, atol=1e-4)

    # --- larger batch exercises the tiled grid + ragged-batch padding path ---
    B2 = 1280
    idx2 = jax.random.randint(k_idx2, (B2, S), 0, VOCAB)
    x2 = jax.nn.one_hot(idx2, VOCAB, dtype=jnp.float32)
    out2_3d = jax.block_until_ready(model(x2))
    out2_2d = jax.block_until_ready(model(idx2))
    ref2 = reference(x2)
    assert out2_3d.shape == (B2, 1) and out2_2d.shape == (B2, 1)
    assert jnp.allclose(out2_3d, ref2, atol=1e-4)
    assert jnp.allclose(out2_2d, ref2, atol=1e-4)

    print("KERNEL_OK")
</pallas_src>

<mosaic_0001>
module attributes {stable_mosaic.version = 11 : i64} {
  func.func @_onehot_dga_kernel(%arg0: i32, %arg1: memref<2x320xbf16, #tpu.memory_space<vmem>>, %arg2: memref<320x128xf32, #tpu.memory_space<vmem>>, %arg3: memref<1x128xf32, #tpu.memory_space<vmem>>, %arg4: memref<1x128xf32, #tpu.memory_space<vmem>>, %arg5: memref<1xf32, #tpu.memory_space<smem>>, %arg6: memref<1x2xf32, #tpu.memory_space<vmem>>) attributes {dimension_semantics = [#tpu.dimension_semantics<parallel>], iteration_bounds = array<i64: 1>, scalar_prefetch = 0 : i64, scratch_operands = 0 : i64, tpu.core_type = #tpu.core_type<tc>, window_params = [{transform_indices = @transform_0, window_bounds = array<i64: 2, 320>}, {pipeline_mode = #tpu.pipeline_mode<synchronous>, transform_indices = @transform_1, window_bounds = array<i64: 320, 128>}, {pipeline_mode = #tpu.pipeline_mode<synchronous>, transform_indices = @transform_2, window_bounds = array<i64: 1, 128>}, {pipeline_mode = #tpu.pipeline_mode<synchronous>, transform_indices = @transform_3, window_bounds = array<i64: 1, 128>}, {transform_indices = @transform_4, window_bounds = array<i64: 1>}, {transform_indices = @transform_5, window_bounds = array<i64: 1, 2>}]} {
    %c0 = arith.constant 0 : index
    %c0_0 = arith.constant 0 : index
    %0 = vector.load %arg1[%c0, %c0_0] : memref<2x320xbf16, #tpu.memory_space<vmem>>, vector<2x320xbf16>
    %1 = arith.extf %0 : vector<2x320xbf16> to vector<2x320xf32>
    %c0_1 = arith.constant 0 : index
    %c0_2 = arith.constant 0 : index
    %2 = vector.load %arg2[%c0_1, %c0_2] : memref<320x128xf32, #tpu.memory_space<vmem>>, vector<320x128xf32>
    %cst = arith.constant dense<0.000000e+00> : vector<2x128xf32>
    %3 = tpu.matmul %1, %2, %cst {dimension_numbers = #tpu.dot_dimension_numbers<[1], [0], [0], [1], [0, 0, 1, 1], [], []>} : vector<2x320xf32>, vector<320x128xf32>, vector<2x128xf32> -> vector<2x128xf32>
    %c0_3 = arith.constant 0 : index
    %c0_4 = arith.constant 0 : index
    %4 = vector.load %arg3[%c0_3, %c0_4] : memref<1x128xf32, #tpu.memory_space<vmem>>, vector<1x128xf32>
    %5 = vector.broadcast %4 : vector<1x128xf32> to vector<2x128xf32>
    %6 = arith.addf %3, %5 : vector<2x128xf32>
    %cst_5 = arith.constant 0.000000e+00 : f32
    %7 = vector.broadcast %cst_5 : f32 to vector<2x128xf32>
    %8 = arith.maximumf %6, %7 : vector<2x128xf32>
    %c0_6 = arith.constant 0 : index
    %c0_7 = arith.constant 0 : index
    %9 = vector.load %arg4[%c0_6, %c0_7] : memref<1x128xf32, #tpu.memory_space<vmem>>, vector<1x128xf32>
    %10 = vector.broadcast %9 : vector<1x128xf32> to vector<2x128xf32>
    %11 = arith.mulf %8, %10 : vector<2x128xf32>
    %cst_8 = arith.constant dense<0.000000e+00> : vector<2xf32>
    %12 = vector.multi_reduction <add>, %11, %cst_8 [1] : vector<2x128xf32> to vector<2xf32>
    %c0_9 = arith.constant 0 : index
    %13 = memref.load %arg5[%c0_9] : memref<1xf32, #tpu.memory_space<smem>>
    %14 = vector.broadcast %13 : f32 to vector<2xf32>
    %15 = arith.addf %12, %14 : vector<2xf32>
    %16 = vector.shape_cast %15 : vector<2xf32> to vector<1x2xf32>
    %c0_10 = arith.constant 0 : index
    %c0_11 = arith.constant 0 : index
    %17 = vector.load %arg6[%c0_10, %c0_11] : memref<1x2xf32, #tpu.memory_space<vmem>>, vector<1x2xf32>
    tpu.vector_store %arg6[%c0_10, %c0_11], %16 {strides = array<i32>} : memref<1x2xf32, #tpu.memory_space<vmem>>, vector<1x2xf32>,
    return
  }
  func.func @transform_0(%arg0: i32) -> (i32, i32) {
    %c0_i32 = arith.constant 0 : i32
    %c0_i32_0 = arith.constant 0 : i32
    return %arg0, %c0_i32 : i32, i32
  }
  func.func @transform_1(%arg0: i32) -> (i32, i32) {
    %c0_i32 = arith.constant 0 : i32
    %c0_i32_0 = arith.constant 0 : i32
    %c0_i32_1 = arith.constant 0 : i32
    return %c0_i32, %c0_i32_0 : i32, i32
  }
  func.func @transform_2(%arg0: i32) -> (i32, i32) {
    %c0_i32 = arith.constant 0 : i32
    %c0_i32_0 = arith.constant 0 : i32
    %c0_i32_1 = arith.constant 0 : i32
    return %c0_i32, %c0_i32_0 : i32, i32
  }
  func.func @transform_3(%arg0: i32) -> (i32, i32) {
    %c0_i32 = arith.constant 0 : i32
    %c0_i32_0 = arith.constant 0 : i32
    %c0_i32_1 = arith.constant 0 : i32
    return %c0_i32, %c0_i32_0 : i32, i32
  }
  func.func @transform_4(%arg0: i32) -> i32 {
    %c0_i32 = arith.constant 0 : i32
    %c0_i32_0 = arith.constant 0 : i32
    return %c0_i32 : i32
  }
  func.func @transform_5(%arg0: i32) -> (i32, i32) {
    %c0_i32 = arith.constant 0 : i32
    %c0_i32_0 = arith.constant 0 : i32
    return %c0_i32, %arg0 : i32, i32
  }
}

</mosaic_0001>

<bundles_post_ra>
// kernel: _run_onehot.1
= control target key start
LH: loop header
LB: loop body
LE: loop exit
PB: predicated region body
PF: predicated region fallthrough
CT: control target
= control target key end

     0   :  { %11 = vsyncpa [#allocation4], 0  ;;  %s512_s0 = inlined_call_operand.hbm [shape: bf16[2,320], index: 0, kind: input, shape index: {}]   ;;  %s513_s1 = inlined_call_operand.hbm [shape: f32[320,128], index: 1, kind: input, shape index: {}]   ;;  %s514_s2 = inlined_call_operand.vmem [shape: f32[1,128], index: 2, kind: input, shape index: {}]   ;;  %s515_s3 = inlined_call_operand.vmem [shape: f32[1,128], index: 3, kind: input, shape index: {}]   ;;  %s516_s4 = inlined_call_operand.<no memory space> [shape: f32[1], index: 4, kind: input, shape index: {}]   ;;  %s517_s5 = inlined_call_operand.hbm [shape: f32[1,2], index: 5, kind: output, shape index: {}]  }
   0x1   :  { %12 = vsyncpa [#allocation7], 0 }
   0x2   :  { %13 = vsyncpa [#allocation5], 0  ;;  %s441_s18 = smov [#allocation3]   ;;  %s442_s20 = smov [#allocation6]  }
   0x3   :  { %s20_s19 = sshll.u32 %s441_s18, 4  ;;  %s29_s21 = sshll.u32 %s442_s20, 4  ;;  %s21_s19 = int_to_ptr.vmem [resolvable:$true] %s20_s19  ;;  %s30_s21 = int_to_ptr.vmem [resolvable:$true] %s29_s21 }
   0x4   :  { %s383_s22 = scalar_lea.vmem %s21_s19, 48  ;;  %s387_s23 = scalar_lea.vmem %s21_s19, 64 }
   0x5   :  { %p384_p0 = scmp.ne.s32.totalorder %s21_s19, %s383_s22  ;;  %p388_p1 = scmp.lt.s32.totalorder %s21_s19, %s21_s19 }
   0x6   :  { %p389_p2 = scmp.lt.s32.totalorder %s387_s23, %s383_s22 }
   0x8   :  { %p390_p3 = por %p389_p2, %p388_p1 }
   0xa   :  { %p391_p4 = pnand %p390_p3, %p384_p0 }
   0xc   :  { %394 = shalt.err (!%p391_p4)
}
   0xd   :  { %23 = dma.hbm_to_vmem [thread:$0]  %s512_s0, 48, %s21_s19, [#allocation4]  }
   0xe   :  { %s403_s26 = scalar_lea.vmem %s30_s21, 5120  ;;  %p408_p6 = scmp.lt.s32.totalorder %s30_s21, %s30_s21 }
   0xf   :  { %p404_p5 = scmp.ne.s32.totalorder %s30_s21, %s403_s26  ;;  %p409_p7 = scmp.lt.s32.totalorder %s403_s26, %s403_s26 }
  0x11   :  { %p410_p8 = por %p409_p7, %p408_p6 }
  0x13   :  { %p411_p9 = pnand %p410_p8, %p404_p5 }
  0x15   :  { %414 = shalt.err (!%p411_p9)
}
  0x16   :  { %s443_s27 = smov 128   ;;  %s444_s28 = smov 8  }
  0x17   :  { %35 = dma.hbm_to_vmem [thread:$0]  %s513_s1, 5120, %s30_s21, [#allocation7], %s443_s27, %s443_s27, %s444_s28  }
  0x18   :  { %435 = dma.done.wait [#allocation4], 48  }
  0x19   :  { %436 = vsyncadd [#allocation4], 4294967248 }
  0x1a   :  { %437 = dma.done.wait [#allocation7], 5120  }
  0x1b   :  { %438 = vsyncadd [#allocation7], 4294962176  ;;  %v445_v0 = vmov 0.0   ;;  %vm446_vm0 = vmmov 0   ;;  %v81_v1 = vld [vmem:[#allocation6 + $0xf8] sm:$0xff]  ;;  %v80_v3 = vld [vmem:[#allocation6 + $0xf0] sm:$0xff]  ;;  %v102_v9 = vlaneseq }
  0x1c   :  { %348 = vmatprep.subr.mxu1 %v445_v0  ;;  %364 = vmatprep.mubr.msk.f32.mxu1 %vm446_vm0, %v445_v0  ;;  %v65_v2 = vld [vmem:[#allocation6 + $0x78] sm:$0xff]  ;;  %v64_v4 = vld [vmem:[#allocation6 + $0x70] sm:$0xff]  ;;  %v79_v5 = vld [vmem:[#allocation6 + $0xe8] sm:$0xff]  ;;  %v447_v7 = vmov 1983009808   ;;  %vm116_vm1 = vcmask 523264  }
  0x1d   :  { %304 = vmatprep.subr.mxu0 %v81_v1  ;;  %v63_v6 = vld [vmem:[#allocation6 + $0x68] sm:$0xff]  ;;  %v100_v8 = vunpack.c.l.s4 %v447_v7  ;;  %v78_v10 = vld [vmem:[#allocation6 + $0xe0] sm:$0xff]  ;;  %v77_v12 = vld [vmem:[#allocation6 + $0xd8] sm:$0xff]  ;;  %v488_v16 = vshrl.u32 %v102_v9, 7  ;;  %vm268_vm2 = vcmask 1041408   ;;  %v277_v1 = vand.u32 127, %v102_v9 }
  0x1e   :  { %305 = vmatpush3.msra.mxu0 %v65_v2  ;;  %v62_v11 = vld [vmem:[#allocation6 + $0x60] sm:$0xff]  ;;  %v61_v13 = vld [vmem:[#allocation6 + $0x58] sm:$0xff]  ;;  %v76_v17 = vld [vmem:[#allocation6 + $0xd0] sm:$0xff]  ;;  %v273_v2 = vstv %s516_s4  ;;  %vm283_vm3 = vcmask 8192  }
  0x1f   :  { %306 = vmatprep.subr.mxu0 %v80_v3  ;;  %v89_v14 = vld [vmem:[#allocation6 + $0x138] sm:$0xff]  ;;  %v101_v15 = vunpack.c.0.s8 %v100_v8  ;;  %v88_v18 = vld [vmem:[#allocation6 + $0x130] sm:$0xff]  ;;  %v87_v20 = vld [vmem:[#allocation6 + $0x128] sm:$0xff]  ;;  %v280_v3 = vsub.s32 %v277_v1, %v488_v16 }
  0x20   :  { %307 = vmatpush3.msra.mxu0 %v64_v4  ;;  %349 = vmatpush3.msra.mxu1 %v89_v14  ;;  %v60_v19 = vld [vmem:[#allocation6 + $0x50] sm:$0xff]  ;;  %v75_v21 = vld [vmem:[#allocation6 + $0xc8] sm:$0xff]  ;;  %v86_v23 = vld [vmem:[#allocation6 + $0x120] sm:$0xff] }
  0x21   :  { %308 = vmatprep.subr.mxu0 %v79_v5  ;;  %350 = vmatprep.subr.mxu1 %v445_v0  ;;  %v59_v22 = vld [vmem:[#allocation6 + $0x48] sm:$0xff]  ;;  %v104_v24 = vsub.s32 %v101_v15, %v488_v16  ;;  %v74_v25 = vld [vmem:[#allocation6 + $0xc0] sm:$0xff]  ;;  %v48_v26 = vld [vmem:[#allocation3] sm:$0x7] }
  0x22   :  { %309 = vmatpush3.msra.mxu0 %v63_v6  ;;  %351 = vmatpush3.msra.mxu1 %v88_v18  ;;  %v58_v27 = vld [vmem:[#allocation6 + $0x40] sm:$0xff]  ;;  %v85_v28 = vld [vmem:[#allocation6 + $0x118] sm:$0xff]  ;;  %v49_v29 = vunpack.c.l.bf16 %v48_v26  ;;  %v84_v33 = vld [vmem:[#allocation6 + $0x110] sm:$0xff] }
  0x23   :  { %310 = vmatprep.subr.mxu0 %v78_v10  ;;  %352 = vmatprep.subr.mxu1 %v445_v0  ;;  %v73_v30 = vld [vmem:[#allocation6 + $0xb8] sm:$0xff]  ;;  %v72_v34 = vld [vmem:[#allocation6 + $0xb0] sm:$0xff]  ;;  %v71_v38 = vld [vmem:[#allocation6 + $0xa8] sm:$0xff] }
  0x24   :  { %311 = vmatpush3.msra.mxu0 %v62_v11  ;;  %353 = vmatpush3.msra.mxu1 %v87_v20  ;;  %v57_v31 = vld [vmem:[#allocation6 + $0x38] sm:$0xff]  ;;  %v105_v32 = vrot.slane %v49_v29, %v104_v24  ;;  %v98_v35 = vcombine.high %v49_v29, %v49_v29  ;;  %v56_v36 = vld [vmem:[#allocation6 + $0x30] sm:$0xff]  ;;  %v83_v39 = vld [vmem:[#allocation6 + $0x108] sm:$0xff] }
  0x25   :  { %312 = vmatprep.subr.mxu0 %v77_v12  ;;  %354 = vmatprep.subr.mxu1 %v445_v0  ;;  %v55_v40 = vld [vmem:[#allocation6 + $0x28] sm:$0xff]  ;;  %v70_v41 = vld [vmem:[#allocation6 + $0xa0] sm:$0xff]  ;;  %v69_v45 = vld [vmem:[#allocation6 + $0x98] sm:$0xff] }
  0x26   :  { %313 = vmatpush3.msra.mxu0 %v61_v13  ;;  %355 = vmatpush3.msra.mxu1 %v86_v23  ;;  %v113_v37 = vcombine.high %v105_v32, %v105_v32  ;;  %v112_v42 = vrot.slane %v98_v35, %v104_v24  ;;  %v82_v43 = vld [vmem:[#allocation6 + $0x100] sm:$0xff]  ;;  %v53_v46 = vld [vmem:[#allocation6 + $0x18] sm:$0xff]  ;;  %v68_v47 = vld [vmem:[#allocation6 + $0x90] sm:$0xff] }
  0x27   :  { %314 = vmatprep.subr.mxu0 %v76_v17  ;;  %356 = vmatprep.subr.mxu1 %v445_v0  ;;  %v54_v44 = vld [vmem:[#allocation6 + $0x20] sm:$0xff]  ;;  %v52_v48 = vld [vmem:[#allocation6 + $0x10] sm:$0xff]  ;;  %v67_v49 = vld [vmem:[#allocation6 + $0x88] sm:$0xff] }
  0x28   :  { %315 = vmatpush3.msra.mxu0 %v60_v19  ;;  %357 = vmatpush3.msra.mxu1 %v85_v28  ;;  %v51_v50 = vld [vmem:[#allocation6 + $0x8] sm:$0xff]  ;;  %v66_v51 = vld [vmem:[#allocation6 + $0x80] sm:$0xff]  ;;  %v301_v57 = vld [vmem:[%s514_s2] ss:$0 sm:$0xff]  ;;  %s448_s2 = smov [#allocation8]  }
  0x29   :  { %316 = vmatprep.subr.mxu0 %v75_v21  ;;  %358 = vmatprep.subr.mxu1 %v445_v0  ;;  %v50_v52 = vld [vmem:[#allocation6] sm:$0xff]  ;;  %v303_v61 = vld [vmem:[%s515_s3] ss:$0 sm:$0xff]  ;;  %s291_s10 = sshll.u32 %s448_s2, 4  ;;  %s292_s10 = int_to_ptr.vmem [resolvable:$true] %s291_s10 }
  0x2a   :  { %317 = vmatpush3.msra.mxu0 %v59_v22  ;;  %359 = vmatpush3.msra.mxu1 %v84_v33  ;;  %s415_s3 = scalar_lea.vmem %s292_s10, 16  ;;  %s419_s11 = scalar_lea.vmem %s292_s10, 32 }
  0x2b   :  { %318 = vmatprep.subr.mxu0 %v74_v25  ;;  %183 = vmatprep.mubr.f32.mxu0 %v113_v37  ;;  %p416_p10 = scmp.ne.s32.totalorder %s292_s10, %s415_s3  ;;  %p420_p11 = scmp.lt.s32.totalorder %s292_s10, %s292_s10 }
  0x2c   :  { %319 = vmatpush3.msra.mxu0 %v58_v27  ;;  %360 = vmatprep.subr.mxu1 %v445_v0  ;;  %p421_p12 = scmp.lt.s32.totalorder %s419_s11, %s415_s3 }
  0x2d   :  { %320 = vmatprep.subr.mxu0 %v73_v30  ;;  %361 = vmatpush3.msra.mxu1 %v83_v39 }
  0x2e   :  { %321 = vmatpush3.msra.mxu0 %v57_v31  ;;  %362 = vmatprep.subr.mxu1 %v445_v0  ;;  %p422_p13 = por %p421_p12, %p420_p11 }
  0x2f   :  { %322 = vmatprep.subr.mxu0 %v72_v34  ;;  %363 = vmatpush3.msra.mxu1 %v82_v43 }
  0x30   :  { %323 = vmatpush3.msra.mxu0 %v56_v36  ;;  %365 = vmatmul.mubr.msk.f32.vlgmr.msra.gmra.mxu1 %vm116_vm1, %v112_v42  ;;  %p423_p0 = pnand %p422_p13, %p416_p10 }
  0x31   :  { %324 = vmatprep.subr.mxu0 %v71_v38 }
  0x32   :  { %325 = vmatpush3.msra.mxu0 %v55_v40 }
  0x33   :  { %326 = vmatprep.subr.mxu0 %v70_v41 }
  0x34   :  { %327 = vmatpush3.msra.mxu0 %v54_v44 }
  0x35   :  { %328 = vmatprep.subr.mxu0 %v69_v45 }
  0x36   :  { %329 = vmatpush3.msra.mxu0 %v53_v46 }
  0x37   :  { %330 = vmatprep.subr.mxu0 %v68_v47 }
  0x38   :  { %331 = vmatpush3.msra.mxu0 %v52_v48 }
  0x39   :  { %332 = vmatprep.subr.mxu0 %v67_v49 }
  0x3a   :  { %333 = vmatpush3.msra.mxu0 %v51_v50 }
  0x3b   :  { %334 = vmatprep.subr.mxu0 %v66_v51 }
  0x3c   :  { %335 = vmatpush3.msra.mxu0 %v50_v52 }
  0x3d   :  { %184 = vmatmul.mubr.f32.vlgmr.msra.gmra.mxu0 %v105_v32 }
  0xf0   :  { %v255_v53 = vpop.f32.mrf.mxu1 }
  0xf2   :  { %v366_v54 = vpop.f32.mrf.mxu1 }
  0xfd   :  { %v336_v55 = vpop.f32.mrf.mxu0 }
  0xff   :  { %v337_v56 = vpop.f32.mrf.mxu0 }
 0x100   :  { %v338_v58 = vadd.f32 %v337_v56, %v336_v55 }
 0x102   :  { %v186_v59 = vadd.f32 %v338_v58, %v301_v57 }
 0x104   :  { %v256_v60 = vadd.f32 %v255_v53, %v186_v59 }
 0x106   :  { %v259_v62 = vmax.f32 %v256_v60, 0.0 }
 0x108   :  { %v267_v63 = vmul.f32 %v303_v61, %v259_v62 }
 0x10a   :  { %v269_v0 = vsel %vm268_vm2, %v267_v63, 0.0 }
 0x10b   :  { %270 = vadd.xlane.f32.xlu0 %v269_v0 }
 0x194   :  { %v271_v4 = vpop.xlane.xlu0 %270 }
 0x195   :  { %v274_v5 = vadd.f32 %v273_v2, %v271_v4 }
 0x197   :  { %v281_v6 = vrot.slane %v274_v5, %v280_v3 }
 0x199   :  { %284 = vst.msk [vmem:[#allocation8] sm:$0x1] %vm283_vm3, %v281_v6 }
 0x19a   :  { %426 = shalt.err (!%p423_p0)
}
 0x19b   :  { %294 = dma.vmem_to_hbm [thread:$0]  %s292_s10, 16, %s517_s5, [#allocation5]  }
 0x19c   :  { %439 = dma.done.wait [#allocation5], 16  }
 0x19d   :  { %440 = vsyncadd [#allocation5], 4294967280 }
 0x19e   :  { %298 = vsyncpa [#allocation4], 1 }
 0x19f   :  { %299 = vsyncpa [#allocation7], 1 }
 0x1a0   :  { %300 = vsyncpa [#allocation5], 1 }

</bundles_post_ra>
